<compile_context>
chip_gen: v5e
topology: v5e:2x2
jax: 0.10.0
libtpu: 0.0.40
codegen_flags: <defaults>
</compile_context>

<pallas_src>
import functools

import jax
import jax.numpy as jnp
from jax import lax
from jax.experimental import pallas as pl
from jax.experimental.pallas import tpu as pltpu


_ROW_CHUNK = 256  # rows per in-kernel step: bounds vreg/VMEM temporaries


def _multihot_kernel(idx_ref, out_ref, *, num_labels, n_classes, tile_c,
                     row_chunk, smooth):
    # idx_ref: (tile_b, K) int32 label indices (same block reused across class tiles)
    # out_ref: (tile_b, tile_c) bool / int8 / float block of the multi-hot matrix
    tb, tc = out_ref.shape
    # Class ids covered by this lane-dense tile; (1, tc) so the compare broadcasts over
    # sublanes instead of materializing a (tb, tc) int32 slab.
    class_ids = pl.program_id(1) * tile_c + lax.broadcasted_iota(jnp.int32, (1, tc), 1)

    if smooth is not None:
        hi = jnp.float32(1.0 - smooth + smooth / n_classes)  # folded at trace time
        lo = jnp.float32(smooth / n_classes)

    def emit(r0):
        idx = idx_ref[pl.ds(r0, row_chunk), :]               # (row_chunk, K) int32
        hit = idx[:, 0:1] == class_ids                        # init from 1st label
        if num_labels <= 8:
            for k in range(1, num_labels):                    # unrolled VPU cmp + or
                hit = jnp.logical_or(hit, idx[:, k:k + 1] == class_ids)
        else:
            def k_body(k, h):
                col = lax.dynamic_slice_in_dim(idx, k, 1, axis=1)
                return jnp.logical_or(h, col == class_ids)
            hit = lax.fori_loop(1, num_labels, k_body, hit, unroll=4)
        if smooth is None:
            out_ref[pl.ds(r0, row_chunk), :] = hit.astype(out_ref.dtype)
        else:
            out_ref[pl.ds(r0, row_chunk), :] = jnp.where(hit, hi, lo).astype(out_ref.dtype)

    n_chunks = tb // row_chunk
    if n_chunks <= 1:
        emit(0)
    else:
        def body(r, carry):
            emit(pl.multiple_of(r * row_chunk, row_chunk))
            return carry
        lax.fori_loop(0, n_chunks, body, 0, unroll=False)


def _vmem_capacity_bytes():
    try:
        return int(pltpu.get_tpu_info().vmem_capacity_bytes)
    except Exception:
        return 64 << 20  # conservative (v7x-sized) fallback


def _build_call(B, K, n_classes, out_dtype, tile_b, tile_c, row_chunk, smooth,
                vmem_limit):
    kernel = functools.partial(
        _multihot_kernel, num_labels=K, n_classes=n_classes, tile_c=tile_c,
        row_chunk=row_chunk, smooth=smooth)
    return pl.pallas_call(
        kernel,
        out_shape=jax.ShapeDtypeStruct((B, n_classes), out_dtype),
        grid_spec=pltpu.PrefetchScalarGridSpec(
            num_scalar_prefetch=0,
            grid=(pl.cdiv(B, tile_b), pl.cdiv(n_classes, tile_c)),
            # Class axis innermost: the (tile_b, K) index block keeps the same block
            # index across consecutive steps, so Pallas fetches it once per batch tile.
            in_specs=[pl.BlockSpec((tile_b, K), lambda i, j: (i, 0))],
            out_specs=pl.BlockSpec((tile_b, tile_c), lambda i, j: (i, j)),
        ),
        compiler_params=pltpu.CompilerParams(
            dimension_semantics=("parallel", "parallel"),
            vmem_limit_bytes=vmem_limit,
        ),
    )


def multi_hot(target, n_classes, smooth=None, *, dtype=None, max_tile_c=2048):
    """Pallas TPU implementation of MultiHot.forward for integer index inputs.

    target: int array of shape (B, K), (K,), or scalar (normalized like the torch code).
    dtype:  output dtype; default bool when smooth is None (torch default), float32 when
            smoothing (pass jnp.bfloat16 to halve HBM write bytes on the smooth path).
    Returns the jnp.squeeze()-ed (B, n_classes) array.
    """
    target = jnp.asarray(target, jnp.int32)
    if target.ndim == 0:
        target = target[None, None]
    elif target.ndim == 1:
        target = target[None, :]
    B, K = target.shape

    if dtype is not None:
        out_dtype = jnp.dtype(dtype)
    else:
        out_dtype = jnp.dtype(jnp.float32) if smooth is not None else jnp.dtype(jnp.bool_)
    out_bytes = out_dtype.itemsize

    # ---- per-chip sizing (128 MiB VMEM on v5e/v6e, 64 MiB on v7x) ----
    vmem_cap = _vmem_capacity_bytes()
    vmem_limit = min(96 << 20, vmem_cap * 3 // 4)        # 96 MiB v5e/v6e, 48 MiB v7x
    out_block_budget = min(16 << 20, vmem_cap // 8)      # per-output-buffer budget

    # ---- class (lane) tiling: exact output width, edge blocks clipped by Pallas ----
    max_tile_c = max(128, (max_tile_c // 128) * 128)     # keep lane-rule compliant
    tile_c = n_classes if n_classes <= max_tile_c else max_tile_c

    # ---- batch (sublane) tiling ----
    row_budget = max(8, out_block_budget // (tile_c * out_bytes))
    if B <= _ROW_CHUNK:
        tile_b = B                                       # full dim -> always legal
        row_chunk = B
    else:
        row_chunk = _ROW_CHUNK
        tile_b = (row_budget // row_chunk) * row_chunk
        tile_b = max(row_chunk, min(tile_b, 4096))
        # Keep >= 2 batch tiles when possible so both v7x TensorCores get work.
        half = pl.cdiv((B + 1) // 2, row_chunk) * row_chunk
        tile_b = min(tile_b, max(row_chunk, half))

    def run(dt):
        return _build_call(B, K, n_classes, dt, tile_b, tile_c, row_chunk, smooth,
                           vmem_limit)(target)

    if out_dtype == jnp.dtype(jnp.bool_):
        try:
            out = run(jnp.bool_)       # bool written in-kernel: no convert epilogue
        except Exception:
            # TODO(synk): fallback if this Pallas/Mosaic build rejects bool outputs.
            out = run(jnp.int8).astype(jnp.bool_)
    else:
        out = run(out_dtype)
    return jnp.squeeze(out)


if __name__ == "__main__":
    key = jax.random.PRNGKey(0)
    B, K, C = 16, 4, 32
    # each row holds K class indices (duplicates allowed, as in the torch loop)
    target = jax.random.randint(key, (B, K), 0, C, dtype=jnp.int32)

    # default config: dtype=bool, smooth=None
    out_bool = jax.block_until_ready(multi_hot(target, n_classes=C))
    # smoothed variant (float32 output, torch parity)
    out_smooth = jax.block_until_ready(multi_hot(target, n_classes=C, smooth=0.1))

    # pure-JAX reference
    onehot = (target[:, :, None] == jnp.arange(C)[None, None, :]).any(axis=1)
    assert out_bool.shape == (B, C) and out_bool.dtype == jnp.bool_
    assert bool(jnp.all(out_bool == onehot))
    ref_smooth = 0.9 * onehot.astype(jnp.float32) + 0.1 / C
    assert out_smooth.shape == (B, C) and out_smooth.dtype == jnp.float32
    assert bool(jnp.allclose(out_smooth, ref_smooth, atol=1e-6))

    print("KERNEL_OK")
</pallas_src>

<mosaic_0001>
module attributes {stable_mosaic.version = 11 : i64} {
  func.func @_multihot_kernel(%arg0: i32, %arg1: i32, %arg2: memref<16x4xi32, #tpu.memory_space<vmem>>, %arg3: memref<16x32xi32, #tpu.memory_space<vmem>>) attributes {dimension_semantics = [#tpu.dimension_semantics<parallel>, #tpu.dimension_semantics<parallel>], iteration_bounds = array<i64: 1, 1>, scalar_prefetch = 0 : i64, scratch_operands = 0 : i64, tpu.core_type = #tpu.core_type<tc>, window_params = [{transform_indices = @transform_0, window_bounds = array<i64: 16, 4>}, {transform_indices = @transform_1, window_bounds = array<i64: 16, 32>}]} {
    %c32_i32 = arith.constant 32 : i32
    %0 = arith.muli %arg1, %c32_i32 : i32
    %1 = tpu.iota {dimensions = array<i32: 1>} : vector<1x32xi32>
    %2 = vector.broadcast %0 : i32 to vector<1x32xi32>
    %3 = arith.addi %2, %1 : vector<1x32xi32>
    %c0 = arith.constant 0 : index
    %c0_0 = arith.constant 0 : index
    %4 = vector.load %arg2[%c0, %c0_0] : memref<16x4xi32, #tpu.memory_space<vmem>>, vector<16x4xi32>
    %5 = vector.extract_strided_slice %4 {offsets = [0, 0], sizes = [16, 1], strides = [1, 1]} : vector<16x4xi32> to vector<16x1xi32>
    %6 = vector.broadcast %5 : vector<16x1xi32> to vector<16x32xi32>
    %7 = vector.broadcast %3 : vector<1x32xi32> to vector<16x32xi32>
    %8 = arith.cmpi eq, %6, %7 : vector<16x32xi32>
    %9 = vector.extract_strided_slice %4 {offsets = [0, 1], sizes = [16, 1], strides = [1, 1]} : vector<16x4xi32> to vector<16x1xi32>
    %10 = vector.broadcast %9 : vector<16x1xi32> to vector<16x32xi32>
    %11 = vector.broadcast %3 : vector<1x32xi32> to vector<16x32xi32>
    %12 = arith.cmpi eq, %10, %11 : vector<16x32xi32>
    %13 = arith.ori %8, %12 : vector<16x32xi1>
    %14 = vector.extract_strided_slice %4 {offsets = [0, 2], sizes = [16, 1], strides = [1, 1]} : vector<16x4xi32> to vector<16x1xi32>
    %15 = vector.broadcast %14 : vector<16x1xi32> to vector<16x32xi32>
    %16 = vector.broadcast %3 : vector<1x32xi32> to vector<16x32xi32>
    %17 = arith.cmpi eq, %15, %16 : vector<16x32xi32>
    %18 = arith.ori %13, %17 : vector<16x32xi1>
    %19 = vector.extract_strided_slice %4 {offsets = [0, 3], sizes = [16, 1], strides = [1, 1]} : vector<16x4xi32> to vector<16x1xi32>
    %20 = vector.broadcast %19 : vector<16x1xi32> to vector<16x32xi32>
    %21 = vector.broadcast %3 : vector<1x32xi32> to vector<16x32xi32>
    %22 = arith.cmpi eq, %20, %21 : vector<16x32xi32>
    %23 = arith.ori %18, %22 : vector<16x32xi1>
    %c0_1 = arith.constant 0 : index
    %c0_2 = arith.constant 0 : index
    %24 = vector.load %arg3[%c0_1, %c0_2] : memref<16x32xi32, #tpu.memory_space<vmem>>, vector<16x32xi32>
    %25 = arith.extui %23 : vector<16x32xi1> to vector<16x32xi32>
    %cst = arith.constant dense<0> : vector<16x32xi32>
    %26 = arith.cmpi ne, %24, %cst : vector<16x32xi32>
    tpu.vector_store %arg3[%c0_1, %c0_2], %25 {strides = array<i32>} : memref<16x32xi32, #tpu.memory_space<vmem>>, vector<16x32xi32>,
    return
  }
  func.func @transform_0(%arg0: i32, %arg1: i32) -> (i32, i32) {
    %c0_i32 = arith.constant 0 : i32
    %c0_i32_0 = arith.constant 0 : i32
    return %arg0, %c0_i32 : i32, i32
  }
  func.func @transform_1(%arg0: i32, %arg1: i32) -> (i32, i32) {
    %c0_i32 = arith.constant 0 : i32
    return %arg0, %arg1 : i32, i32
  }
}

module attributes {stable_mosaic.version = 11 : i64} {
  func.func @_multihot_kernel(%arg0: i32, %arg1: i32, %arg2: memref<16x4xi32, #tpu.memory_space<vmem>>, %arg3: memref<16x32xi8, #tpu.memory_space<vmem>>) attributes {dimension_semantics = [#tpu.dimension_semantics<parallel>, #tpu.dimension_semantics<parallel>], iteration_bounds = array<i64: 1, 1>, scalar_prefetch = 0 : i64, scratch_operands = 0 : i64, tpu.core_type = #tpu.core_type<tc>, window_params = [{transform_indices = @transform_0, window_bounds = array<i64: 16, 4>}, {transform_indices = @transform_1, window_bounds = array<i64: 16, 32>}]} {
    %c32_i32 = arith.constant 32 : i32
    %0 = arith.muli %arg1, %c32_i32 : i32
    %1 = tpu.iota {dimensions = array<i32: 1>} : vector<1x32xi32>
    %2 = vector.broadcast %0 : i32 to vector<1x32xi32>
    %3 = arith.addi %2, %1 : vector<1x32xi32>
    %c0 = arith.constant 0 : index
    %c0_0 = arith.constant 0 : index
    %4 = vector.load %arg2[%c0, %c0_0] : memref<16x4xi32, #tpu.memory_space<vmem>>, vector<16x4xi32>
    %5 = vector.extract_strided_slice %4 {offsets = [0, 0], sizes = [16, 1], strides = [1, 1]} : vector<16x4xi32> to vector<16x1xi32>
    %6 = vector.broadcast %5 : vector<16x1xi32> to vector<16x32xi32>
    %7 = vector.broadcast %3 : vector<1x32xi32> to vector<16x32xi32>
    %8 = arith.cmpi eq, %6, %7 : vector<16x32xi32>
    %9 = vector.extract_strided_slice %4 {offsets = [0, 1], sizes = [16, 1], strides = [1, 1]} : vector<16x4xi32> to vector<16x1xi32>
    %10 = vector.broadcast %9 : vector<16x1xi32> to vector<16x32xi32>
    %11 = vector.broadcast %3 : vector<1x32xi32> to vector<16x32xi32>
    %12 = arith.cmpi eq, %10, %11 : vector<16x32xi32>
    %13 = arith.ori %8, %12 : vector<16x32xi1>
    %14 = vector.extract_strided_slice %4 {offsets = [0, 2], sizes = [16, 1], strides = [1, 1]} : vector<16x4xi32> to vector<16x1xi32>
    %15 = vector.broadcast %14 : vector<16x1xi32> to vector<16x32xi32>
    %16 = vector.broadcast %3 : vector<1x32xi32> to vector<16x32xi32>
    %17 = arith.cmpi eq, %15, %16 : vector<16x32xi32>
    %18 = arith.ori %13, %17 : vector<16x32xi1>
    %19 = vector.extract_strided_slice %4 {offsets = [0, 3], sizes = [16, 1], strides = [1, 1]} : vector<16x4xi32> to vector<16x1xi32>
    %20 = vector.broadcast %19 : vector<16x1xi32> to vector<16x32xi32>
    %21 = vector.broadcast %3 : vector<1x32xi32> to vector<16x32xi32>
    %22 = arith.cmpi eq, %20, %21 : vector<16x32xi32>
    %23 = arith.ori %18, %22 : vector<16x32xi1>
    %24 = arith.extui %23 : vector<16x32xi1> to vector<16x32xi8>
    %c0_1 = arith.constant 0 : index
    %c0_2 = arith.constant 0 : index
    %25 = vector.load %arg3[%c0_1, %c0_2] : memref<16x32xi8, #tpu.memory_space<vmem>>, vector<16x32xi8>
    tpu.vector_store %arg3[%c0_1, %c0_2], %24 {strides = array<i32>} : memref<16x32xi8, #tpu.memory_space<vmem>>, vector<16x32xi8>,
    return
  }
  func.func @transform_0(%arg0: i32, %arg1: i32) -> (i32, i32) {
    %c0_i32 = arith.constant 0 : i32
    %c0_i32_0 = arith.constant 0 : i32
    return %arg0, %c0_i32 : i32, i32
  }
  func.func @transform_1(%arg0: i32, %arg1: i32) -> (i32, i32) {
    %c0_i32 = arith.constant 0 : i32
    return %arg0, %arg1 : i32, i32
  }
}

</mosaic_0001>

<bundles_post_ra>
// kernel: tpu_custom_call.1
= control target key start
LH: loop header
LB: loop body
LE: loop exit
PB: predicated region body
PF: predicated region fallthrough
CT: control target
= control target key end

     0   :  { %v71_v0 = vmov 1   ;;  %v72_v1 = vmov 0   ;;  %v73_v3 = vmov 2   ;;  %v74_v5 = vmov 3   ;;  %s97_s0 = inlined_call_operand.vmem [shape: s32[16,4], index: 0, kind: input, shape index: {}]   ;;  %s98_s1 = inlined_call_operand.vmem [shape: s32[16,32], index: 1, kind: output, shape index: {}]  }
   0x1   :  { %67 = vset.pattern.permute.xlu1 %v71_v0  ;;  %66 = vset.pattern.permute.xlu0 %v72_v1  ;;  %v13_v2 = vld [vmem:[%s97_s0] sm:$0xff]  ;;  %v14_v4 = vld [vmem:[%s97_s0 + $0x8] sm:$0xff]  ;;  %v9_v9 = vlaneseq  ;;  %vm55_vm9 = vcmask 261120  }
   0x2   :  { %24 = vperm.xlu1 %67, %v13_v2   ;;  %16 = vperm.xlu0 %66, %v13_v2  }
   0x3   :  { %68 = vset.pattern.permute.xlu2 %v73_v3  ;;  %v10_v10 = vand.u32 127, %v9_v9 }
   0x4   :  { %34 = vperm.xlu2 %68, %v13_v2  }
   0xa   :  { %27 = vperm.xlu1 %67, %v14_v4   ;;  %19 = vperm.xlu0 %66, %v14_v4  }
   0xc   :  { %37 = vperm.xlu2 %68, %v14_v4  }
  0x12   :  { %70 = vset.pattern.permute.xlu1 %v74_v5  ;;  %69 = vset.pattern.permute.xlu0 %v74_v5 }
  0x13   :  { %47 = vperm.xlu1 %70, %v14_v4   ;;  %44 = vperm.xlu0 %69, %v13_v2  }
  0x5e   :  { %v35_v8 = vpop.permute.xlu2 %34 }
  0x5f   :  { %vm39_vm4 = vcmp.eq.s32.totalorder %v35_v8, %v10_v10 }
  0x66   :  { %v38_v13 = vpop.permute.xlu2 %37 }
  0x67   :  { %vm40_vm6 = vcmp.eq.s32.totalorder %v38_v13, %v10_v10 }
  0x74   :  { %v25_v6 = vpop.permute.xlu1 %24  ;;  %v17_v7 = vpop.permute.xlu0 %16 }
  0x75   :  { %vm29_vm0 = vcmp.eq.s32.totalorder %v25_v6, %v10_v10  ;;  %vm21_vm1 = vcmp.eq.s32.totalorder %v17_v7, %v10_v10 }
  0x76   :  { %vm31_vm5 = vmor %vm21_vm1, %vm29_vm0 }
  0x77   :  { %vm41_vm8 = vmor %vm31_vm5, %vm39_vm4 }
  0x7c   :  { %v28_v11 = vpop.permute.xlu1 %27  ;;  %v20_v12 = vpop.permute.xlu0 %19 }
  0x7d   :  { %vm30_vm2 = vcmp.eq.s32.totalorder %v28_v11, %v10_v10  ;;  %vm22_vm3 = vcmp.eq.s32.totalorder %v20_v12, %v10_v10 }
  0x7e   :  { %vm32_vm7 = vmor %vm22_vm3, %vm30_vm2 }
  0x7f   :  { %vm42_vm10 = vmor %vm32_vm7, %vm40_vm6 }
  0x85   :  { %v48_v14 = vpop.permute.xlu1 %47  ;;  %v45_v15 = vpop.permute.xlu0 %44 }
  0x86   :  { %vm50_vm11 = vcmp.eq.s32.totalorder %v48_v14, %v10_v10  ;;  %vm49_vm12 = vcmp.eq.s32.totalorder %v45_v15, %v10_v10 }
  0x87   :  { %vm52_vm13 = vmor %vm42_vm10, %vm50_vm11 }
  0x88   :  { %v54_v16 = vsel %vm52_vm13, 1, %v72_v1  ;;  %vm51_vm14 = vmor %vm41_vm8, %vm49_vm12 }
  0x89   :  { %57 = vst.msk [vmem:[%s98_s1 + $0x8] sm:$0xff] %vm55_vm9, %v54_v16  ;;  %v53_v17 = vsel %vm51_vm14, 1, %v72_v1 }
  0x8a   :  { %56 = vst.msk [vmem:[%s98_s1] sm:$0xff] %vm55_vm9, %v53_v17 }

// kernel: tpu_custom_call.1
= control target key start
LH: loop header
LB: loop body
LE: loop exit
PB: predicated region body
PF: predicated region fallthrough
CT: control target
= control target key end

     0   :  { %v127_v1 = vmov 1   ;;  %v128_v2 = vmov 0   ;;  %s153_s0 = inlined_call_operand.vmem [shape: s32[16,4], index: 0, kind: input, shape index: {}]   ;;  %s154_s1 = inlined_call_operand.hbm [shape: s8[16,32], index: 1, kind: output, shape index: {}]  }
   0x1   :  { %v16_v0 = vld [vmem:[%s153_s0] sm:$0xff]  ;;  %97 = vset.pattern.permute.xlu1 %v127_v1  ;;  %96 = vset.pattern.permute.xlu0 %v128_v2 }
   0x2   :  { %6 = vsyncpa [#allocation3], 0  ;;  %27 = vperm.xlu1 %97, %v16_v0   ;;  %19 = vperm.xlu0 %96, %v16_v0   ;;  %v129_v3 = vmov 2   ;;  %v17_v4 = vld [vmem:[%s153_s0 + $0x8] sm:$0xff]  ;;  %v130_v5 = vmov 3   ;;  %v12_v9 = vlaneseq  ;;  %s131_s0 = smov [#allocation2]  }
   0x3   :  { %98 = vset.pattern.permute.xlu2 %v129_v3  ;;  %s75_s10 = sshll.u32 %s131_s0, 4  ;;  %s77_s13 = sshll.u32 %s154_s1, 4  ;;  %s76_s10 = int_to_ptr.vmem [resolvable:$true] %s75_s10  ;;  %s78_s13 = int_to_ptr.hbm [resolvable:$true] %s77_s13 }
   0x4   :  { %37 = vperm.xlu2 %98, %v16_v0   ;;  %v13_v10 = vand.u32 127, %v12_v9  ;;  %s132_s14 = smov 32   ;;  %s133_s15 = smov 2  }
   0xa   :  { %30 = vperm.xlu1 %97, %v17_v4   ;;  %22 = vperm.xlu0 %96, %v17_v4  }
   0xc   :  { %40 = vperm.xlu2 %98, %v17_v4  }
  0x12   :  { %100 = vset.pattern.permute.xlu1 %v130_v5  ;;  %99 = vset.pattern.permute.xlu0 %v130_v5 }
  0x13   :  { %50 = vperm.xlu1 %100, %v17_v4   ;;  %47 = vperm.xlu0 %99, %v16_v0  }
  0x5e   :  { %v38_v8 = vpop.permute.xlu2 %37 }
  0x5f   :  { %vm42_vm4 = vcmp.eq.s32.totalorder %v38_v8, %v13_v10 }
  0x66   :  { %v41_v13 = vpop.permute.xlu2 %40 }
  0x67   :  { %vm43_vm6 = vcmp.eq.s32.totalorder %v41_v13, %v13_v10 }
  0x74   :  { %v28_v6 = vpop.permute.xlu1 %27  ;;  %v20_v7 = vpop.permute.xlu0 %19 }
  0x75   :  { %vm32_vm0 = vcmp.eq.s32.totalorder %v28_v6, %v13_v10  ;;  %vm24_vm1 = vcmp.eq.s32.totalorder %v20_v7, %v13_v10 }
  0x76   :  { %vm34_vm5 = vmor %vm24_vm1, %vm32_vm0  ;;  %vm68_vm0 = vcmask 254976  }
  0x77   :  { %vm44_vm8 = vmor %vm34_vm5, %vm42_vm4 }
  0x7c   :  { %v31_v11 = vpop.permute.xlu1 %30  ;;  %v23_v12 = vpop.permute.xlu0 %22 }
  0x7d   :  { %vm33_vm2 = vcmp.eq.s32.totalorder %v31_v11, %v13_v10  ;;  %vm25_vm3 = vcmp.eq.s32.totalorder %v23_v12, %v13_v10 }
  0x7e   :  { %vm35_vm7 = vmor %vm25_vm3, %vm33_vm2 }
  0x7f   :  { %vm45_vm9 = vmor %vm35_vm7, %vm43_vm6 }
  0x85   :  { %v51_v14 = vpop.permute.xlu1 %50  ;;  %v48_v15 = vpop.permute.xlu0 %47 }
  0x86   :  { %vm53_vm10 = vcmp.eq.s32.totalorder %v51_v14, %v13_v10  ;;  %vm52_vm11 = vcmp.eq.s32.totalorder %v48_v15, %v13_v10 }
  0x87   :  { %vm55_vm12 = vmor %vm45_vm9, %vm53_vm10 }
  0x88   :  { %vm54_vm13 = vmor %vm44_vm8, %vm52_vm11 }
  0x89   :  { %vm56_vm14 = vmpackc.low %vm55_vm12, %vm54_vm13 }
  0x8a   :  { %v57_v16 = vsel %vm56_vm14, 16711935, %v128_v2 }
  0x8b   :  { %v59_v17 = vpack.c.b8 %v57_v16, %v57_v16 }
  0x8d   :  { %vm60_vm15 = vnez %v59_v17 }
  0x8e   :  { %v61_v18 = vsel %vm60_vm15, 16843009, %v128_v2 }
  0x8f   :  { %v62_v19 = vunpack.c.0.s8 %v61_v18  ;;  %v63_v20 = vunpack.c.1.s8 %v61_v18 }
  0x91   :  { %v64_v21 = vpack.c.b16 %v62_v19, %v62_v19  ;;  %v66_v22 = vpack.c.b16 %v63_v20, %v63_v20 }
  0x93   :  { %v65_v23 = vpack.c.b8 %v64_v21, %v64_v21  ;;  %v67_v24 = vpack.c.b8 %v66_v22, %v66_v22 }
  0x95   :  { %69 = vst.msk [vmem:[#allocation2] sm:$0x3] %vm68_vm0, %v65_v23 }
  0x96   :  { %70 = vst.msk [vmem:[#allocation2 + $0x2] sm:$0x3] %vm68_vm0, %v67_v24 }
  0x97   :  { %83 = dma.vmem_to_hbm [thread:$0]  %s76_s10, 64, %s78_s13, [#allocation3], %s132_s14, %s132_s14, %s133_s15  }
  0x98   :  { %125 = dma.done.wait [#allocation3], 64  }
  0x99   :  { %126 = vsyncadd [#allocation3], 4294967232 }
  0x9a   :  { %88 = vsyncpa [#allocation3], 1 }

</bundles_post_ra>
